<compile_context>
chip_gen: v7x
topology: tpu7x:2x2x1
jax: 0.10.0
libtpu: 0.0.40
codegen_flags: <defaults>
</compile_context>

<pallas_src>
import jax
import jax.numpy as jnp
from jax.experimental import pallas as pl
from jax.experimental.pallas import tpu as pltpu

# ----------------------------- small, consistent config -----------------------------
B = 2
IN_CHANS = 3
IMG_SIZE = 32
PATCH_SIZE = 4
EMBED_DIM = 96
USE_NORM = True            # swin_ynet builds PatchEmbed with norm_layer=nn.LayerNorm
EPS = 1e-5
DTYPE = jnp.float32

HP = IMG_SIZE // PATCH_SIZE
WP = IMG_SIZE // PATCH_SIZE
NUM_PATCHES = HP * WP                       # 64 tokens per image
K = IN_CHANS * PATCH_SIZE * PATCH_SIZE      # 48 features per patch
ROWS = B * NUM_PATCHES                      # 128 total rows
ROW_BLOCK = 64                              # 2 grid steps -> both TCs on v7x


# ================================== Pallas kernel ==================================

def patch_embed_kernel(p_ref, w_ref, b_ref, g_ref, beta_ref, o_ref):
    """Fused patch projection + bias + LayerNorm on one (ROW_BLOCK, K) slab.

    p_ref:    (ROW_BLOCK, K)   im2col patch rows
    w_ref:    (K, E)           transposed Conv2d weight (E, Cin, p, p) -> (K, E)
    b_ref:    (1, E)           Conv2d bias
    g_ref:    (1, E)           LayerNorm gamma
    beta_ref: (1, E)           LayerNorm beta
    o_ref:    (ROW_BLOCK, E)
    """
    y = jnp.dot(p_ref[...], w_ref[...], preferred_element_type=jnp.float32)
    y = y + b_ref[...]
    if USE_NORM:
        mean = jnp.mean(y, axis=-1, keepdims=True)
        var = jnp.mean((y - mean) ** 2, axis=-1, keepdims=True)
        y = (y - mean) * jax.lax.rsqrt(var + EPS) * g_ref[...] + beta_ref[...]
    o_ref[...] = y.astype(o_ref.dtype)


def patch_embed_call(patches, w_t, bias, gamma, beta):
    rows, k = patches.shape
    e = w_t.shape[1]
    n_blocks = rows // ROW_BLOCK
    return pl.pallas_call(
        patch_embed_kernel,
        out_shape=jax.ShapeDtypeStruct((rows, e), DTYPE),
        grid=(n_blocks,),
        in_specs=[
            pl.BlockSpec((ROW_BLOCK, k), lambda i: (i, 0)),
            pl.BlockSpec((k, e), lambda i: (0, 0)),
            pl.BlockSpec((1, e), lambda i: (0, 0)),
            pl.BlockSpec((1, e), lambda i: (0, 0)),
            pl.BlockSpec((1, e), lambda i: (0, 0)),
        ],
        out_specs=pl.BlockSpec((ROW_BLOCK, e), lambda i: (i, 0)),
        compiler_params=pltpu.CompilerParams(
            dimension_semantics=("parallel",)),
    )(patches, w_t, bias, gamma, beta)


# ============================ wrapper (layout glue only) ============================

def extract_patches(x):
    """(B, Cin, H, W) -> (B*Hp*Wp, Cin*p*p), feature order (c, kh, kw) so it matches
    torch Conv2d weight.reshape(embed_dim, -1)."""
    b, c, h, w = x.shape
    xp = x.reshape(b, c, HP, PATCH_SIZE, WP, PATCH_SIZE)
    xp = jnp.transpose(xp, (0, 2, 4, 1, 3, 5))          # (B, Hp, Wp, C, p, p)
    return xp.reshape(b * HP * WP, c * PATCH_SIZE * PATCH_SIZE)


def patch_embed_forward(x, params):
    patches = extract_patches(x)
    out2d = patch_embed_call(patches, params["w_t"], params["bias"],
                             params["gamma"], params["beta"])
    return out2d.reshape(B, NUM_PATCHES, EMBED_DIM)      # (B, L, embed_dim)


def reference_forward(x, params):
    """Pure-JAX reference: real strided conv + flatten/transpose + LayerNorm."""
    w_conv = params["w_t"].T.reshape(EMBED_DIM, IN_CHANS, PATCH_SIZE, PATCH_SIZE)
    y = jax.lax.conv_general_dilated(
        x, w_conv, window_strides=(PATCH_SIZE, PATCH_SIZE), padding="VALID",
        dimension_numbers=("NCHW", "OIHW", "NCHW"),
        precision=jax.lax.Precision.HIGHEST)
    y = y + params["bias"].reshape(1, EMBED_DIM, 1, 1)
    y = y.reshape(B, EMBED_DIM, NUM_PATCHES).transpose(0, 2, 1)   # (B, L, E)
    if USE_NORM:
        mean = jnp.mean(y, axis=-1, keepdims=True)
        var = jnp.mean((y - mean) ** 2, axis=-1, keepdims=True)
        y = (y - mean) / jnp.sqrt(var + EPS) * params["gamma"] + params["beta"]
    return y


def init_params(key):
    k1, k2, k3, k4 = jax.random.split(key, 4)
    p = {}
    # torch Conv2d weight is (E, Cin, p, p); keep it pre-transposed as (K, E) for x @ W.
    p["w_t"] = (0.05 * jax.random.normal(k1, (K, EMBED_DIM))).astype(DTYPE)
    p["bias"] = (0.05 * jax.random.normal(k2, (1, EMBED_DIM))).astype(DTYPE)
    p["gamma"] = (1.0 + 0.1 * jax.random.normal(k3, (1, EMBED_DIM))).astype(DTYPE)
    p["beta"] = (0.1 * jax.random.normal(k4, (1, EMBED_DIM))).astype(DTYPE)
    return p


if __name__ == "__main__":
    key = jax.random.PRNGKey(0)
    kx, kp = jax.random.split(key)
    x = jax.random.normal(kx, (B, IN_CHANS, IMG_SIZE, IMG_SIZE), dtype=DTYPE)
    params = init_params(kp)

    out = patch_embed_forward(x, params)
    out = jax.block_until_ready(out)

    assert out.shape == (B, NUM_PATCHES, EMBED_DIM)
    assert bool(jnp.all(jnp.isfinite(out)))

    ref = jax.block_until_ready(reference_forward(x, params))
    assert bool(jnp.allclose(out, ref, atol=1e-2, rtol=1e-2)), (
        float(jnp.max(jnp.abs(out - ref))))

    print("KERNEL_OK")
</pallas_src>

<mosaic_0001>
module attributes {stable_mosaic.version = 11 : i64} {
  func.func @patch_embed_kernel(%arg0: i32, %arg1: memref<64x48xf32, #tpu.memory_space<vmem>>, %arg2: memref<48x96xf32, #tpu.memory_space<vmem>>, %arg3: memref<1x96xf32, #tpu.memory_space<vmem>>, %arg4: memref<1x96xf32, #tpu.memory_space<vmem>>, %arg5: memref<1x96xf32, #tpu.memory_space<vmem>>, %arg6: memref<64x96xf32, #tpu.memory_space<vmem>>) attributes {dimension_semantics = [#tpu.dimension_semantics<parallel>], iteration_bounds = array<i64: 2>, scalar_prefetch = 0 : i64, scratch_operands = 0 : i64, tpu.core_type = #tpu.core_type<tc>, window_params = [{transform_indices = @transform_0, window_bounds = array<i64: 64, 48>}, {pipeline_mode = #tpu.pipeline_mode<synchronous>, transform_indices = @transform_1, window_bounds = array<i64: 48, 96>}, {pipeline_mode = #tpu.pipeline_mode<synchronous>, transform_indices = @transform_2, window_bounds = array<i64: 1, 96>}, {pipeline_mode = #tpu.pipeline_mode<synchronous>, transform_indices = @transform_3, window_bounds = array<i64: 1, 96>}, {pipeline_mode = #tpu.pipeline_mode<synchronous>, transform_indices = @transform_4, window_bounds = array<i64: 1, 96>}, {transform_indices = @transform_5, window_bounds = array<i64: 64, 96>}]} {
    %c0 = arith.constant 0 : index
    %c0_0 = arith.constant 0 : index
    %0 = vector.load %arg1[%c0, %c0_0] : memref<64x48xf32, #tpu.memory_space<vmem>>, vector<64x48xf32>
    %c0_1 = arith.constant 0 : index
    %c0_2 = arith.constant 0 : index
    %1 = vector.load %arg2[%c0_1, %c0_2] : memref<48x96xf32, #tpu.memory_space<vmem>>, vector<48x96xf32>
    %cst = arith.constant dense<0.000000e+00> : vector<64x96xf32>
    %2 = tpu.matmul %0, %1, %cst {dimension_numbers = #tpu.dot_dimension_numbers<[1], [0], [0], [1], [0, 0, 1, 1], [], []>} : vector<64x48xf32>, vector<48x96xf32>, vector<64x96xf32> -> vector<64x96xf32>
    %c0_3 = arith.constant 0 : index
    %c0_4 = arith.constant 0 : index
    %3 = vector.load %arg3[%c0_3, %c0_4] : memref<1x96xf32, #tpu.memory_space<vmem>>, vector<1x96xf32>
    %4 = vector.broadcast %3 : vector<1x96xf32> to vector<64x96xf32>
    %5 = arith.addf %2, %4 : vector<64x96xf32>
    %cst_5 = arith.constant dense<0.000000e+00> : vector<64xf32>
    %6 = vector.multi_reduction <add>, %5, %cst_5 [1] : vector<64x96xf32> to vector<64xf32>
    %7 = vector.shape_cast %6 : vector<64xf32> to vector<64x1xf32>
    %cst_6 = arith.constant 9.600000e+01 : f32
    %8 = vector.broadcast %cst_6 : f32 to vector<64x1xf32>
    %9 = arith.divf %7, %8 : vector<64x1xf32>
    %10 = vector.broadcast %9 : vector<64x1xf32> to vector<64x96xf32>
    %11 = arith.subf %5, %10 : vector<64x96xf32>
    %12 = arith.mulf %11, %11 : vector<64x96xf32>
    %cst_7 = arith.constant dense<0.000000e+00> : vector<64xf32>
    %13 = vector.multi_reduction <add>, %12, %cst_7 [1] : vector<64x96xf32> to vector<64xf32>
    %14 = vector.shape_cast %13 : vector<64xf32> to vector<64x1xf32>
    %cst_8 = arith.constant 9.600000e+01 : f32
    %15 = vector.broadcast %cst_8 : f32 to vector<64x1xf32>
    %16 = arith.divf %14, %15 : vector<64x1xf32>
    %17 = vector.broadcast %9 : vector<64x1xf32> to vector<64x96xf32>
    %18 = arith.subf %5, %17 : vector<64x96xf32>
    %cst_9 = arith.constant 9.99999974E-6 : f32
    %19 = vector.broadcast %cst_9 : f32 to vector<64x1xf32>
    %20 = arith.addf %16, %19 : vector<64x1xf32>
    %21 = math.rsqrt %20 : vector<64x1xf32>
    %22 = vector.broadcast %21 : vector<64x1xf32> to vector<64x96xf32>
    %23 = arith.mulf %18, %22 : vector<64x96xf32>
    %c0_10 = arith.constant 0 : index
    %c0_11 = arith.constant 0 : index
    %24 = vector.load %arg4[%c0_10, %c0_11] : memref<1x96xf32, #tpu.memory_space<vmem>>, vector<1x96xf32>
    %25 = vector.broadcast %24 : vector<1x96xf32> to vector<64x96xf32>
    %26 = arith.mulf %23, %25 : vector<64x96xf32>
    %c0_12 = arith.constant 0 : index
    %c0_13 = arith.constant 0 : index
    %27 = vector.load %arg5[%c0_12, %c0_13] : memref<1x96xf32, #tpu.memory_space<vmem>>, vector<1x96xf32>
    %28 = vector.broadcast %27 : vector<1x96xf32> to vector<64x96xf32>
    %29 = arith.addf %26, %28 : vector<64x96xf32>
    %c0_14 = arith.constant 0 : index
    %c0_15 = arith.constant 0 : index
    %30 = vector.load %arg6[%c0_14, %c0_15] : memref<64x96xf32, #tpu.memory_space<vmem>>, vector<64x96xf32>
    tpu.vector_store %arg6[%c0_14, %c0_15], %29 {strides = array<i32>} : memref<64x96xf32, #tpu.memory_space<vmem>>, vector<64x96xf32>,
    return
  }
  func.func @transform_0(%arg0: i32) -> (i32, i32) {
    %c0_i32 = arith.constant 0 : i32
    %c0_i32_0 = arith.constant 0 : i32
    return %arg0, %c0_i32 : i32, i32
  }
  func.func @transform_1(%arg0: i32) -> (i32, i32) {
    %c0_i32 = arith.constant 0 : i32
    %c0_i32_0 = arith.constant 0 : i32
    %c0_i32_1 = arith.constant 0 : i32
    return %c0_i32, %c0_i32_0 : i32, i32
  }
  func.func @transform_2(%arg0: i32) -> (i32, i32) {
    %c0_i32 = arith.constant 0 : i32
    %c0_i32_0 = arith.constant 0 : i32
    %c0_i32_1 = arith.constant 0 : i32
    return %c0_i32, %c0_i32_0 : i32, i32
  }
  func.func @transform_3(%arg0: i32) -> (i32, i32) {
    %c0_i32 = arith.constant 0 : i32
    %c0_i32_0 = arith.constant 0 : i32
    %c0_i32_1 = arith.constant 0 : i32
    return %c0_i32, %c0_i32_0 : i32, i32
  }
  func.func @transform_4(%arg0: i32) -> (i32, i32) {
    %c0_i32 = arith.constant 0 : i32
    %c0_i32_0 = arith.constant 0 : i32
    %c0_i32_1 = arith.constant 0 : i32
    return %c0_i32, %c0_i32_0 : i32, i32
  }
  func.func @transform_5(%arg0: i32) -> (i32, i32) {
    %c0_i32 = arith.constant 0 : i32
    %c0_i32_0 = arith.constant 0 : i32
    return %arg0, %c0_i32 : i32, i32
  }
}

</mosaic_0001>

<bundles_post_ra>
// kernel: tpu_custom_call.1
= control target key start
LH: loop header
LB: loop body
LE: loop exit
PB: predicated region body
PF: predicated region fallthrough
CT: control target
= control target key end

     0   :  { %s719_s18 = smov 0   ;;  %s852_s0 = inlined_call_operand.vmem [shape: f32[128,48], index: 0, kind: input, shape index: {}]   ;;  %s853_s1 = inlined_call_operand.vmem [shape: f32[48,96], index: 1, kind: input, shape index: {}]   ;;  %s854_s2 = inlined_call_operand.vmem [shape: f32[1,96], index: 2, kind: input, shape index: {}]   ;;  %s855_s3 = inlined_call_operand.vmem [shape: f32[1,96], index: 3, kind: input, shape index: {}]   ;;  %s856_s4 = inlined_call_operand.vmem [shape: f32[1,96], index: 4, kind: input, shape index: {}]   ;;  %s857_s5 = inlined_call_operand.vmem [shape: f32[128,96], index: 5, kind: output, shape index: {}]  }
   0x1 LB: > { %s579_s19 = sadd.s32 4294967295, %s687_s18   ;;  %p583_p0 = scmp.ge.s32.totalorder %s687_s18, 1  ;;  %s687_s18 = sphi %s719_s18, %s15_s18  }
   0x2   : > { %p188_p1 = scmp.lt.s32.totalorder %s687_s18, 3 }
   0x4   : > { %p189_p2 = pnand %p583_p0, %p188_p1 }
   0x5   : > { %v236_v0 = vld [vmem:[%s853_s1] sm:$0xff] (!%p189_p2)  ;;  %v237_v1 = vld [vmem:[%s853_s1 + $0x8] sm:$0xff] (!%p189_p2)  ;;  %v238_v2 = vld [vmem:[%s853_s1 + $0x10] sm:$0xff] (!%p189_p2)  ;;  %s584_s26 = sshll.u32 (!%p189_p2), %s579_s19, 3  ;;  %vm249_vm0 = vcmask (!%p189_p2), 392192   ;;  %vm379_vm1 = vcmask (!%p189_p2), 785408  }
   0x6   : > { %192 = sbr.rel (%p189_p2) target bundleno = 564 (0x234), region = 40  ;;  %v639_v3 = vpack.c.bf16 (!%p189_p2), %v237_v1, %v236_v0  ;;  %v239_v4 = vld [vmem:[%s853_s1 + $0x18] sm:$0xff] (!%p189_p2)  ;;  %p217_p3 = scmp.lt.s32.totalorder (!%p189_p2), %s584_s26, 15  ;;  %v240_v6 = vld [vmem:[%s853_s1 + $0x20] sm:$0xff] (!%p189_p2)  ;;  %v241_v7 = vld [vmem:[%s853_s1 + $0x28] sm:$0xff] (!%p189_p2) }
   0x7   : > { %v643_v5 = vpack.c.bf16 (!%p189_p2), %v239_v4, %v238_v2  ;;  %v647_v8 = vpack.c.bf16 (!%p189_p2), %v241_v7, %v240_v6  ;;  %v588_v17 = vld [vmem:[%s854_s2] ss:$0 sm:$0xff] (!%p189_p2) }
   0x8   : > { %640 = vmatprep.subr.bf16.mxu0 (!%p189_p2), %v639_v3  ;;  %651 = vmatprep.subr.bf16.mxu1 (!%p189_p2), %v639_v3 }
   0x9   : > { %642 = vmatpush3.bf16.msra.mxu0 (!%p189_p2), %v639_v3  ;;  %654 = vmatpush3.bf16.msra.mxu1 (!%p189_p2), %v639_v3 }
   0xa   : > { %644 = vmatprep.subr.bf16.mxu0 (!%p189_p2), %v643_v5  ;;  %652 = vmatprep.subr.bf16.mxu1 (!%p189_p2), %v643_v5 }
   0xd   : > { %s859_s26 = smov (!%p217_p3, %s584_s26), 15  ;;  %646 = vmatpush3.bf16.msra.mxu0 %v643_v5  ;;  %655 = vmatpush3.bf16.msra.mxu1 %v643_v5 }
   0xe   : > { %s585_s8 = sshll.u32 %s859_s26, 3  ;;  %648 = vmatprep.subr.bf16.mxu0 %v647_v8  ;;  %653 = vmatprep.subr.bf16.mxu1 %v647_v8 }
   0xf   : > { %s220_s11 = scalar_lea.vmem %s852_s0, %s585_s8  ;;  %s824_s21 = scalar_lea.vmem %s857_s5, %s585_s8 }
  0x10   : > { %v228_v9 = vld [vmem:[%s220_s11] sm:$0xff]  ;;  %v229_v11 = vld [vmem:[%s220_s11 + $0x8] sm:$0xff]  ;;  %v230_v13 = vld [vmem:[%s220_s11 + $0x10] sm:$0xff] }
  0x11   : > { %v232_v10 = vld [vmem:[%s220_s11 + $0x20] sm:$0xff]  ;;  %627 = vmatprep.mubr.msk.f32.mxu0 %vm249_vm0, %v228_v9  ;;  %650 = vmatpush3.bf16.msra.mxu0 %v647_v8  ;;  %v233_v12 = vld [vmem:[%s220_s11 + $0x28] sm:$0xff]  ;;  %v234_v14 = vld [vmem:[%s220_s11 + $0x30] sm:$0xff] }
  0x12   : > { %633 = vmatprep.mubr.msk.f32.mxu1 %vm249_vm0, %v232_v10  ;;  %656 = vmatpush3.bf16.msra.mxu1 %v647_v8  ;;  %v231_v15 = vld [vmem:[%s220_s11 + $0x18] sm:$0xff] }
  0x13   : > { %v235_v16 = vld [vmem:[%s220_s11 + $0x38] sm:$0xff] }
  0x14   : > { %628 = vmatmul.mubr.msk.f32.vlgmr.msra.gmra.mrb[0].mxu0 %vm249_vm0, %v229_v11 }
  0x15   : > { %634 = vmatmul.mubr.msk.f32.vlgmr.msra.gmra.mrb[0].mxu1 %vm249_vm0, %v233_v12  ;;  %630 = vmatprep.mubr.msk.f32.mxu0 %vm249_vm0, %v230_v13 }
  0x16   : > { %636 = vmatprep.mubr.msk.f32.mxu1 %vm249_vm0, %v234_v14 }
  0x18   : > { %631 = vmatmul.mubr.msk.f32.gmra.mrb[2].mxu0 %vm249_vm0, %v231_v15 }
  0x19   : > { %637 = vmatmul.mubr.msk.f32.gmra.mrb[2].mxu1 %vm249_vm0, %v235_v16 }
  0xe7   : > { %v629_v18 = vpop.f32.mrb[0].mxu0 }
  0xe8   : > { %v635_v19 = vpop.f32.mrb[0].mxu1  ;;  %v346_v20 = vadd.f32 %v629_v18, %v588_v17  ;;  %v340_v22 = vpop.f32.mrb[1].mxu0 }
  0xe9   : > { %v366_v21 = vadd.f32 %v635_v19, %v588_v17  ;;  %v360_v23 = vpop.f32.mrb[1].mxu1  ;;  %v341_v24 = vadd.f32 %v588_v17, %v340_v22 }
  0xea   : > { %v383_v26 = vsel %vm379_vm1, %v346_v20, 0.0  ;;  %v361_v33 = vadd.f32 %v588_v17, %v360_v23 }
  0xeb   : > { %v395_v25 = vsel %vm379_vm1, %v366_v21, 0.0  ;;  %384 = vadd.xlane.f32.xlu0 %v383_v26  ;;  %v632_v27 = vpop.f32.mrb[2].mxu0  ;;  %v380_v35 = vsel %vm379_vm1, %v341_v24, 0.0 }
  0xec   : > { %396 = vadd.xlane.f32.xlu1 %v395_v25  ;;  %v638_v28 = vpop.f32.mrb[2].mxu1  ;;  %v356_v29 = vadd.f32 %v632_v27, %v588_v17  ;;  %v350_v30 = vpop.f32.mrb[3].mxu0  ;;  %v392_v39 = vsel %vm379_vm1, %v361_v33, 0.0 }
  0xed   : > { %v370_v31 = vpop.f32.mrb[3].mxu1  ;;  %v351_v32 = vadd.f32 %v588_v17, %v350_v30  ;;  %v376_v36 = vadd.f32 %v638_v28, %v588_v17 }
  0xee   : > { %v389_v34 = vsel %vm379_vm1, %v356_v29, 0.0  ;;  %v371_v37 = vadd.f32 %v588_v17, %v370_v31 }
  0xef   : > { %381 = vadd.xlane.f32.xlu0 %v380_v35  ;;  %v386_v38 = vsel %vm379_vm1, %v351_v32, 0.0  ;;  %v401_v40 = vsel %vm379_vm1, %v376_v36, 0.0 }
  0xf0   : > { %390 = vadd.xlane.f32.xlu1 %v389_v34  ;;  %v398_v41 = vsel %vm379_vm1, %v371_v37, 0.0 }
  0xf3   : > { %393 = vadd.xlane.f32.xlu0 %v392_v39 }
  0xf4   : > { %387 = vadd.xlane.f32.xlu1 %v386_v38  ;;  %v597_v38 = vld [vmem:[%s855_s3] ss:$0 sm:$0xff] }
  0xf7   : > { %399 = vadd.xlane.f32.xlu0 %v398_v41 }
  0xf8   : > { %402 = vadd.xlane.f32.xlu1 %v401_v40 }
 0x178   : > { %v385_v43 = vpop.xlane.xlu0 %384 }
 0x179   : > { %v397_v42 = vpop.xlane.xlu1 %396  ;;  %v406_v45 = vmul.f32 0.010416667, %v385_v43  ;;  %v598_v43 = vld [vmem:[%s856_s4] ss:$0 sm:$0xff] }
 0x17a   : > { %v410_v44 = vmul.f32 0.010416667, %v397_v42 }
 0x17b   : > { %v774_v47 = vsub.f32 %v346_v20, %v406_v45 }
 0x17c   : > { %v772_v46 = vsub.f32 %v366_v21, %v410_v44  ;;  %v382_v49 = vpop.xlane.xlu0 %381 }
 0x17d   : > { %v391_v48 = vpop.xlane.xlu1 %390  ;;  %v405_v51 = vmul.f32 0.010416667, %v382_v49  ;;  %v422_v52 = vmul.f32 %v774_v47, %v774_v47 }
 0x17e   : > { %v408_v50 = vmul.f32 0.010416667, %v391_v48  ;;  %v426_v56 = vmul.f32 %v772_v46, %v772_v46 }
 0x17f   : > { %v780_v54 = vsub.f32 %v341_v24, %v405_v51  ;;  %v432_v55 = vsel %vm379_vm1, %v422_v52, 0.0 }
 0x180   : > { %v778_v53 = vsub.f32 %v356_v29, %v408_v50  ;;  %433 = vadd.xlane.f32.xlu1 %v432_v55  ;;  %v394_v58 = vpop.xlane.xlu0 %393  ;;  %v444_v1 = vsel %vm379_vm1, %v426_v56, 0.0 }
 0x181   : > { %v388_v57 = vpop.xlane.xlu1 %387  ;;  %v409_v60 = vmul.f32 0.010416667, %v394_v58  ;;  %v421_v61 = vmul.f32 %v780_v54, %v780_v54 }
 0x182   : > { %v407_v59 = vmul.f32 0.010416667, %v388_v57  ;;  %v424_v62 = vmul.f32 %v778_v53, %v778_v53 }
 0x183   : > { %v791_v0 = vsub.f32 %v361_v33, %v409_v60  ;;  %v429_v2 = vsel %vm379_vm1, %v421_v61, 0.0 }
 0x184   : > { %v789_v63 = vsub.f32 %v351_v32, %v407_v59  ;;  %445 = vadd.xlane.f32.xlu1 %v444_v1  ;;  %430 = vadd.xlane.f32.xlu0 %v429_v2  ;;  %v400_v4 = vpop.xlane.xlu0 %399  ;;  %v438_v8 = vsel %vm379_vm1, %v424_v62, 0.0 }
 0x185   : > { %v403_v3 = vpop.xlane.xlu1 %402  ;;  %v411_v6 = vmul.f32 0.010416667, %v400_v4  ;;  %v425_v7 = vmul.f32 %v791_v0, %v791_v0 }
 0x186   : > { %v412_v5 = vmul.f32 0.010416667, %v403_v3  ;;  %v423_v12 = vmul.f32 %v789_v63, %v789_v63 }
 0x187   : > { %v800_v10 = vsub.f32 %v371_v37, %v411_v6  ;;  %v441_v11 = vsel %vm379_vm1, %v425_v7, 0.0 }
 0x188   : > { %v798_v9 = vsub.f32 %v376_v36, %v412_v5  ;;  %439 = vadd.xlane.f32.xlu1 %v438_v8  ;;  %442 = vadd.xlane.f32.xlu0 %v441_v11  ;;  %v435_v15 = vsel %vm379_vm1, %v423_v12, 0.0 }
 0x189   : > { %v427_v16 = vmul.f32 %v800_v10, %v800_v10 }
 0x18a   : > { %v428_v13 = vmul.f32 %v798_v9, %v798_v9 }
 0x18b   : > { %v447_v17 = vsel %vm379_vm1, %v427_v16, 0.0 }
 0x18c   : > { %v450_v14 = vsel %vm379_vm1, %v428_v13, 0.0  ;;  %436 = vadd.xlane.f32.xlu0 %v435_v15 }
 0x18d   : > { %451 = vadd.xlane.f32.xlu1 %v450_v14 }
 0x190   : > { %448 = vadd.xlane.f32.xlu0 %v447_v17 }
 0x20d   : > { %v434_v18 = vpop.xlane.xlu1 %433 }
 0x20e   : > { %v454_v19 = vmul.f32 0.010416667, %v434_v18 }
 0x210   : > { %v462_v20 = vadd.f32 1e-05, %v454_v19 }
 0x211   : > { %v446_v21 = vpop.xlane.xlu1 %445  ;;  %v431_v22 = vpop.xlane.xlu0 %430 }
 0x212   : > { %665 = vrsqrt.f32 %v462_v20  ;;  %v458_v23 = vmul.f32 0.010416667, %v446_v21  ;;  %v453_v24 = vmul.f32 0.010416667, %v431_v22 }
 0x214   : > { %v466_v25 = vadd.f32 1e-05, %v458_v23  ;;  %v461_v26 = vadd.f32 1e-05, %v453_v24 }
 0x215   : > { %v440_v27 = vpop.xlane.xlu1 %439  ;;  %v443_v28 = vpop.xlane.xlu0 %442 }
 0x216   : > { %667 = vrsqrt.f32 %v466_v25  ;;  %v456_v29 = vmul.f32 0.010416667, %v440_v27  ;;  %v457_v30 = vmul.f32 0.010416667, %v443_v28 }
 0x217   : > { %669 = vrsqrt.f32 %v461_v26 }
 0x218   : > { %v464_v31 = vadd.f32 1e-05, %v456_v29  ;;  %v465_v32 = vadd.f32 1e-05, %v457_v30 }
 0x219   : > { %v437_v34 = vpop.xlane.xlu0 %436 }
 0x21a   : > { %v452_v33 = vpop.xlane.xlu1 %451  ;;  %671 = vrsqrt.f32 %v464_v31  ;;  %v455_v36 = vmul.f32 0.010416667, %v437_v34 }
 0x21b   : > { %v460_v35 = vmul.f32 0.010416667, %v452_v33  ;;  %673 = vrsqrt.f32 %v465_v32 }
 0x21c   : > { %v666_v37 = vpop.eup %665  ;;  %v463_v40 = vadd.f32 1e-05, %v455_v36 }
 0x21d   : > { %v468_v39 = vadd.f32 1e-05, %v460_v35  ;;  %v478_v41 = vmul.f32 %v666_v37, %v774_v47  ;;  %v449_v42 = vpop.xlane.xlu0 %448 }
 0x21e   : > { %v459_v44 = vmul.f32 0.010416667, %v449_v42 }
 0x21f   : > { %675 = vrsqrt.f32 %v468_v39  ;;  %v493_v45 = vmul.f32 %v597_v38, %v478_v41 }
 0x220   : > { %677 = vrsqrt.f32 %v463_v40  ;;  %v668_v48 = vpop.eup %667  ;;  %v467_v49 = vadd.f32 1e-05, %v459_v44 }
 0x221   : > { %v670_v47 = vpop.eup %669  ;;  %v508_v50 = vadd.f32 %v598_v43, %v493_v45  ;;  %v482_v51 = vmul.f32 %v668_v48, %v772_v46 }
 0x222   : > { %v477_v52 = vmul.f32 %v670_v47, %v780_v54  ;;  %679 = vrsqrt.f32 %v467_v49 }
 0x223   : > { %516 = vst.msk [vmem:[%s824_s21 + $0x8] sm:$0xff] %vm379_vm1, %v508_v50  ;;  %v497_v55 = vmul.f32 %v597_v38, %v482_v51 }
 0x224   : > { %v672_v56 = vpop.eup %671  ;;  %v492_v57 = vmul.f32 %v597_v38, %v477_v52 }
 0x225   : > { %v674_v58 = vpop.eup %673  ;;  %v512_v59 = vadd.f32 %v598_v43, %v497_v55  ;;  %v480_v60 = vmul.f32 %v672_v56, %v778_v53 }
 0x226   : > { %v507_v61 = vadd.f32 %v598_v43, %v492_v57  ;;  %v481_v62 = vmul.f32 %v674_v58, %v791_v0 }
 0x227   : > { %520 = vst.msk [vmem:[%s824_s21 + $0x28] sm:$0xff] %vm379_vm1, %v512_v59  ;;  %v495_v46 = vmul.f32 %v597_v38, %v480_v60 }
 0x228   : > { %515 = vst.msk [vmem:[%s824_s21] sm:$0xff] %vm379_vm1, %v507_v61  ;;  %v496_v54 = vmul.f32 %v597_v38, %v481_v62 }
 0x229   : > { %v676_v1 = vpop.eup %675  ;;  %v510_v3 = vadd.f32 %v598_v43, %v495_v46 }
 0x22a   : > { %v678_v2 = vpop.eup %677  ;;  %v484_v4 = vmul.f32 %v676_v1, %v798_v9  ;;  %v511_v5 = vadd.f32 %v598_v43, %v496_v54 }
 0x22b   : > { %v479_v53 = vmul.f32 %v678_v2, %v789_v63  ;;  %518 = vst.msk [vmem:[%s824_s21 + $0x18] sm:$0xff] %vm379_vm1, %v510_v3 }
 0x22c   : > { %v499_v0 = vmul.f32 %v597_v38, %v484_v4  ;;  %v680_v6 = vpop.eup %679  ;;  %519 = vst.msk [vmem:[%s824_s21 + $0x20] sm:$0xff] %vm379_vm1, %v511_v5 }
 0x22d   : > { %v494_v7 = vmul.f32 %v597_v38, %v479_v53  ;;  %v483_v11 = vmul.f32 %v680_v6, %v800_v10 }
 0x22e   : > { %v514_v8 = vadd.f32 %v598_v43, %v499_v0 }
 0x22f   : > { %v509_v12 = vadd.f32 %v598_v43, %v494_v7  ;;  %v498_v13 = vmul.f32 %v597_v38, %v483_v11 }
 0x230   : > { %522 = vst.msk [vmem:[%s824_s21 + $0x38] sm:$0xff] %vm379_vm1, %v514_v8 }
 0x231   : > { %517 = vst.msk [vmem:[%s824_s21 + $0x10] sm:$0xff] %vm379_vm1, %v509_v12  ;;  %v513_v9 = vadd.f32 %v598_v43, %v498_v13 }
 0x233   : > { %521 = vst.msk [vmem:[%s824_s21 + $0x30] sm:$0xff] %vm379_vm1, %v513_v9 }
 0x234 PF: > { %s15_s18 = sadd.s32 1, %s687_s18  }
 0x235   : > { %p12_p4 = scmp.ge.s32.totalorder %s15_s18, 4  }
 0x237   :  { %14 = sbr.rel (!%p12_p4) target bundleno = 1 (0x1), region = 70 }

</bundles_post_ra>
